<compile_context>
chip_gen: v6e
topology: v6e:2x2x1
jax: 0.10.0
libtpu: 0.0.40
codegen_flags: <defaults>
</compile_context>

<pallas_src>
import functools

import jax
import jax.numpy as jnp
from jax.experimental import pallas as pl
from jax.experimental.pallas import tpu as pltpu

_LANE = 128
_SUBLANE16 = 16                       # bf16 vregs pack 16 sublanes
_VMEM_LIMIT_BYTES = 32 * 1024 * 1024  # safe on v5e/v6e/v7x


def _round_up(x, m):
    return ((x + m - 1) // m) * m


def _pregate_kernel(x_ref, w_ref, b_ref, o_ref, *, compute_dtype):
    # Cast the activation tile to the weight dtype (bf16) in-kernel so the
    # wrapper never materializes an extra copy of x; MXU bf16xbf16 with f32
    # accumulation, bias added in f32, then cast to the output dtype.
    x_tile = x_ref[...].astype(compute_dtype)
    o_ref[...] = (
        jnp.dot(x_tile, w_ref[...], preferred_element_type=jnp.float32)
        + b_ref[...]
    ).astype(o_ref.dtype)


def pregate_init(w, b, *, param_dtype=jnp.bfloat16):
    """One-time parameter prep (module init, NOT per forward).

    w: (num_experts, hidden_dim)  -- PyTorch nn.Linear weight layout
    b: (num_experts,)
    Returns (w_t, b2d, num_experts):
      w_t: (hidden_dim, n_pad) in param_dtype, experts padded to a multiple of 128
      b2d: (1, n_pad) float32
    """
    n_exp, _ = w.shape
    n_pad = _round_up(n_exp, _LANE)
    w_t = jnp.asarray(w, dtype=param_dtype).T
    b_f32 = jnp.asarray(b, dtype=jnp.float32)
    if n_pad != n_exp:
        w_t = jnp.pad(w_t, ((0, 0), (0, n_pad - n_exp)))
        b_f32 = jnp.pad(b_f32, (0, n_pad - n_exp))
    return w_t, b_f32.reshape(1, n_pad), n_exp


def _default_tile_rows():
    # Big tiles amortize the ~0.35us per-grid-step overhead. v5e's slower HBM
    # already hides it at 512 rows; newer generations want 1024+.
    try:
        kind = jax.devices()[0].device_kind.lower()
    except Exception:
        kind = ""
    if "v5 lite" in kind or "v5e" in kind:
        return 512
    return 1024


def _fit_tile_rows(tm, K, n_pad, x_itemsize, w_itemsize, out_itemsize):
    # Keep the double-buffered working set inside the scoped-VMEM limit.
    fixed = 2 * (K * n_pad * w_itemsize + n_pad * 4)       # weight + bias bufs
    budget = _VMEM_LIMIT_BYTES - fixed - (2 << 20)          # 2 MiB slack
    per_row = 2 * (K * x_itemsize + n_pad * out_itemsize)   # x + out tiles
    max_rows = max(_SUBLANE16, (budget // per_row // _SUBLANE16) * _SUBLANE16)
    return max(_SUBLANE16, min(tm, max_rows))


def _choose_tile_rows(M, tm_max):
    if M <= _SUBLANE16:
        return M  # one tiny tile equal to the full row extent (always legal)
    m16 = _round_up(M, _SUBLANE16)
    if m16 <= tm_max:
        # Whole batch would be a single grid step: split into two balanced
        # tiles so both TensorCores of a 2-TC chip (v7x) get work; the extra
        # step is near-free on 1-TC chips.
        return _round_up(pl.cdiv(M, 2), _SUBLANE16)
    return tm_max


def pregate_forward(x, w_t, b2d, num_experts=None, *, tm=None,
                    out_dtype=jnp.float32):
    """PreGate forward: logits = x @ w_t + b.

    x:   (tokens, hidden_dim), any float dtype (consumed as-is, cast in-kernel)
    w_t: (hidden_dim, n_pad)   from pregate_init
    b2d: (1, n_pad) float32    from pregate_init
    Returns (tokens, num_experts) logits in out_dtype.
    """
    M, K = x.shape
    K2, n_pad = w_t.shape
    assert K == K2, (K, K2)
    assert b2d.shape == (1, n_pad), b2d.shape
    assert n_pad % _LANE == 0, n_pad
    if num_experts is None:
        num_experts = n_pad

    if tm is None:
        tm = _default_tile_rows()
    tm = max(_SUBLANE16, (tm // _SUBLANE16) * _SUBLANE16)
    out_itemsize = jnp.dtype(out_dtype).itemsize
    tm = _fit_tile_rows(tm, K, n_pad, x.dtype.itemsize, w_t.dtype.itemsize,
                        out_itemsize)
    tm_eff = _choose_tile_rows(M, tm)

    # Ragged row grid: no M padding; out-of-bounds rows of the last block are
    # garbage compute whose stores Pallas masks (output has exactly M rows).
    grid = (pl.cdiv(M, tm_eff),)

    bytes_accessed = (
        M * K * x.dtype.itemsize
        + K * n_pad * w_t.dtype.itemsize
        + n_pad * 4
        + M * n_pad * out_itemsize
    )

    kernel = functools.partial(_pregate_kernel, compute_dtype=w_t.dtype)

    out = pl.pallas_call(
        kernel,
        out_shape=jax.ShapeDtypeStruct((M, n_pad), out_dtype),
        grid_spec=pltpu.PrefetchScalarGridSpec(
            num_scalar_prefetch=0,
            grid=grid,
            in_specs=[
                pl.BlockSpec((tm_eff, K), lambda i: (i, 0)),   # x row tile
                pl.BlockSpec((K, n_pad), lambda i: (0, 0)),    # full gate weight
                pl.BlockSpec((1, n_pad), lambda i: (0, 0)),    # bias row
            ],
            out_specs=pl.BlockSpec((tm_eff, n_pad), lambda i: (i, 0)),
        ),
        compiler_params=pltpu.CompilerParams(
            dimension_semantics=("parallel",),
            vmem_limit_bytes=_VMEM_LIMIT_BYTES,
        ),
        cost_estimate=pl.CostEstimate(
            flops=2 * M * K * n_pad,
            transcendentals=0,
            bytes_accessed=bytes_accessed,
        ),
    )(x, w_t, b2d)

    if n_pad != num_experts:
        out = out[:, :num_experts]
    return out


if __name__ == "__main__":
    # Scaled-down shapes consistent with the module (hidden_dim -> num_experts).
    tokens = 200        # not tile-aligned: exercises the ragged last block
    hidden_dim = 256    # scaled down from 2048
    num_experts = 96    # scaled down from 128; exercises lane padding to 128

    key = jax.random.PRNGKey(0)
    kx, kw, kb = jax.random.split(key, 3)

    x = jax.random.normal(kx, (tokens, hidden_dim), dtype=jnp.float32)
    # PyTorch nn.Linear layout: W (num_experts, hidden_dim), b (num_experts,)
    w = jax.random.normal(kw, (num_experts, hidden_dim), dtype=jnp.float32) * 0.02
    b = jax.random.normal(kb, (num_experts,), dtype=jnp.float32) * 0.02

    # One-time parameter prep (transpose / bf16 cast / expert padding).
    w_t, b2d, n_experts = pregate_init(w, b)

    out = pregate_forward(x, w_t, b2d, n_experts)
    out = jax.block_until_ready(out)

    # Reference: bf16-rounded inputs, f32 accumulation, f32 bias add.
    ref = (x.astype(jnp.bfloat16).astype(jnp.float32)
           @ w.T.astype(jnp.bfloat16).astype(jnp.float32)) + b[None, :]
    assert out.shape == (tokens, num_experts), out.shape
    assert jnp.allclose(out, ref, atol=2e-2, rtol=2e-2), "mismatch vs reference"

    print("KERNEL_OK")
</pallas_src>

<mosaic_0001>
module attributes {stable_mosaic.version = 11 : i64} {
  func.func @_pregate_kernel(%arg0: i32, %arg1: memref<112x256xf32, #tpu.memory_space<vmem>>, %arg2: memref<256x128xbf16, #tpu.memory_space<vmem>>, %arg3: memref<1x128xf32, #tpu.memory_space<vmem>>, %arg4: memref<112x128xf32, #tpu.memory_space<vmem>>) attributes {dimension_semantics = [#tpu.dimension_semantics<parallel>], iteration_bounds = array<i64: 2>, scalar_prefetch = 0 : i64, scratch_operands = 0 : i64, tpu.core_type = #tpu.core_type<tc>, window_params = [{transform_indices = @transform_0, window_bounds = array<i64: 112, 256>}, {pipeline_mode = #tpu.pipeline_mode<synchronous>, transform_indices = @transform_1, window_bounds = array<i64: 256, 128>}, {pipeline_mode = #tpu.pipeline_mode<synchronous>, transform_indices = @transform_2, window_bounds = array<i64: 1, 128>}, {transform_indices = @transform_3, window_bounds = array<i64: 112, 128>}]} {
    %c0 = arith.constant 0 : index
    %c0_0 = arith.constant 0 : index
    %0 = vector.load %arg1[%c0, %c0_0] : memref<112x256xf32, #tpu.memory_space<vmem>>, vector<112x256xf32>
    %1 = arith.truncf %0 : vector<112x256xf32> to vector<112x256xbf16>
    %c0_1 = arith.constant 0 : index
    %c0_2 = arith.constant 0 : index
    %2 = vector.load %arg2[%c0_1, %c0_2] : memref<256x128xbf16, #tpu.memory_space<vmem>>, vector<256x128xbf16>
    %cst = arith.constant dense<0.000000e+00> : vector<112x128xf32>
    %3 = tpu.matmul %1, %2, %cst {dimension_numbers = #tpu.dot_dimension_numbers<[1], [0], [0], [1], [0, 0, 1, 1], [], []>} : vector<112x256xbf16>, vector<256x128xbf16>, vector<112x128xf32> -> vector<112x128xf32>
    %c0_3 = arith.constant 0 : index
    %c0_4 = arith.constant 0 : index
    %4 = vector.load %arg3[%c0_3, %c0_4] : memref<1x128xf32, #tpu.memory_space<vmem>>, vector<1x128xf32>
    %5 = vector.broadcast %4 : vector<1x128xf32> to vector<112x128xf32>
    %6 = arith.addf %3, %5 : vector<112x128xf32>
    %c0_5 = arith.constant 0 : index
    %c0_6 = arith.constant 0 : index
    %7 = vector.load %arg4[%c0_5, %c0_6] : memref<112x128xf32, #tpu.memory_space<vmem>>, vector<112x128xf32>
    tpu.vector_store %arg4[%c0_5, %c0_6], %6 {strides = array<i32>} : memref<112x128xf32, #tpu.memory_space<vmem>>, vector<112x128xf32>,
    return
  }
  func.func @transform_0(%arg0: i32) -> (i32, i32) {
    %c0_i32 = arith.constant 0 : i32
    %c0_i32_0 = arith.constant 0 : i32
    return %arg0, %c0_i32 : i32, i32
  }
  func.func @transform_1(%arg0: i32) -> (i32, i32) {
    %c0_i32 = arith.constant 0 : i32
    %c0_i32_0 = arith.constant 0 : i32
    %c0_i32_1 = arith.constant 0 : i32
    return %c0_i32, %c0_i32_0 : i32, i32
  }
  func.func @transform_2(%arg0: i32) -> (i32, i32) {
    %c0_i32 = arith.constant 0 : i32
    %c0_i32_0 = arith.constant 0 : i32
    %c0_i32_1 = arith.constant 0 : i32
    return %c0_i32, %c0_i32_0 : i32, i32
  }
  func.func @transform_3(%arg0: i32) -> (i32, i32) {
    %c0_i32 = arith.constant 0 : i32
    %c0_i32_0 = arith.constant 0 : i32
    return %arg0, %c0_i32 : i32, i32
  }
}

</mosaic_0001>

<bundles_post_ra>
// kernel: tpu_custom_call.1
= control target key start
LH: loop header
LB: loop body
LE: loop exit
PB: predicated region body
PF: predicated region fallthrough
CT: control target
= control target key end

     0   :  { %8 = vsyncpa [#allocation3], 0  ;;  %s1209_s0 = inlined_call_operand.hbm [shape: f32[200,256], index: 0, kind: input, shape index: {}]   ;;  %s1210_s1 = inlined_call_operand.hbm [shape: bf16[256,128], index: 1, kind: input, shape index: {}]   ;;  %s1211_s2 = inlined_call_operand.vmem [shape: f32[1,128], index: 2, kind: input, shape index: {}]   ;;  %s1212_s3 = inlined_call_operand.hbm [shape: f32[200,128], index: 3, kind: output, shape index: {}]  }
   0x1   :  { %10 = vsyncpa [#allocation3 + $0x1], 0 }
   0x2   :  { %11 = vsyncpa [#allocation6], 0 }
   0x3   :  { %12 = vsyncpa [#allocation4], 0 }
   0x4   :  { %14 = vsyncpa [#allocation4 + $0x1], 0  ;;  %s949_s12 = smov 0   ;;  %s951_s13 = smov 0  }
   0x5   :  { %s953_s14 = smov 0   ;;  %s955_s15 = smov 0  }
   0x6 LB: > { %s970_s16 = sadd.s32 4294967295, %s918_s15   ;;  %s607_s17 = sadd.s32 4294967294, %s918_s15   ;;  %s918_s15 = sphi %s955_s15, %s1227_s15   ;;  %s914_s14 = sphi %s953_s14, %s1226_s14   ;;  %s910_s13 = sphi %s951_s13, %s1225_s13   ;;  %s906_s12 = sphi %s949_s12, %s1224_s12  }
   0x7   : > { %s974_s18 = sadd.s32 1, %s918_s15   ;;  %s27_s19 = sadd.s32 1, %s914_s14 }
   0x8   : > { %s24_s20 = ssub.s32 %s918_s15, %s974_s18  ;;  %p34_p0 = scmp.ne.s32.totalorder %s914_s14, %s910_s13 }
   0x9   : > { %p25_p1 = scmp.eq.s32.totalorder %s24_s20, 0  ;;  %p35_p2 = scmp.eq.s32.totalorder %s918_s15, 0 }
   0xa   : > { %p40_p3 = scmp.ne.s32.totalorder %s910_s13, %s906_s12  ;;  %p41_p4 = scmp.eq.s32.totalorder %s970_s16, 0 }
   0xb   : > { %s986_s21 = scalar_select %p25_p1, %s914_s14, %s27_s19  }
   0xc   : > { %p988_p5 = por %p35_p2, %p34_p0  ;;  %p994_p6 = por %p41_p4, %p40_p3 }
   0xd   : > { %p106_p7 = scmp.eq.s32.totalorder %s970_s16, 1  ;;  %p112_p8 = scmp.eq.s32.totalorder %s607_s17, 1 }
   0xe   : > { %s1216_s23 = scalar_select %p994_p6, 1, 0 }
   0xf   : > { %p608_p9 = scmp.ge.s32.totalorder %s918_s15, 1  ;;  %p119_p10 = scmp.lt.s32.totalorder %s918_s15, 3 }
  0x10   : > { %p1001_p11 = por %p106_p7, %p34_p0  ;;  %p1005_p12 = por %p112_p8, %p40_p3 }
  0x11   : > { %p1009_p13 = pnand %p608_p9, %p119_p10  ;;  %s920_s27 = smov [#allocation5]  }
  0x12   : > { %s1217_s24 = scalar_select %p1001_p11, 1, 0 }
  0x13   : > { %s1218_s25 = scalar_select %p1005_p12, 1, 0 }
  0x14   : > { %p732_p1 = pneg %p1009_p13  ;;  %s131_s28 = sshll.u32 %s920_s27, 4  ;;  %s132_s28 = int_to_ptr.vmem [resolvable:$true] %s131_s28 }
  0x15   : > { %s809_s29 = scalar_lea.vmem %s132_s28, 2048  ;;  %p817_p8 = scmp.lt.s32.totalorder %s132_s28, %s132_s28 }
  0x16   : > { %p733_p2 = pnand %p732_p1, %p41_p4  ;;  %p810_p7 = scmp.ne.s32.totalorder %s132_s28, %s809_s29 }
  0x17   : > { %p818_p6 = scmp.lt.s32.totalorder %s809_s29, %s809_s29 }
  0x18   : > { %p800_p0 = pneg %p733_p2 }
  0x19   : > { %p819_p12 = por %p818_p6, %p817_p8 }
  0x1a   : > { %p812_p11 = pnand %p810_p7, %p800_p0 }
  0x1c   : > { %p813_p3 = pneg %p812_p11 }
  0x1e   : > { %p820_p9 = pnand %p819_p12, %p813_p3 }
  0x20   : > { %823 = shalt.err (!%p820_p9)
}
  0x21   : > { %s921_s30 = smov 64   ;;  %s922_s4 = smov 4  }
  0x22   : > { %735 = dma.hbm_to_vmem [thread:$0]  (!%p733_p2), %s1210_s1, 2048, %s132_s28, [#allocation6], %s921_s30, %s921_s30, %s922_s4  }
  0x23   : > { %p1214_p10 = scmp.ge.s32.totalorder %s918_s15, 2 }
  0x25   : > { %144 = sbr.rel (%p1214_p10) target bundleno = 76 (0x4c), region = 24 }
  0x2a   : > { %147 = sbr.rel (!%p988_p5) target bundleno = 76 (0x4c), region = 28  ;;  %s148_s7 = sand.u32 (%p988_p5), 1, %s914_s14  }
  0x2b   : > { %s153_s8 = smul.u32 (%p988_p5), 14, %s918_s15  ;;  %s1030_s19 = scalar_lea.sflag (%p988_p5), [#allocation3], %s148_s7 }
  0x2c   : > { %s723_s9 = smul.u32 (%p988_p5), 224, %s148_s7 }
  0x2d   : > { %s154_s10 = ssub.s32 (%p988_p5), 25, %s153_s8 }
  0x2e   : > { %p155_p6 = scmp.lt.s32.totalorder (%p988_p5), %s154_s10, 14  ;;  %s152_s20 = scalar_lea.vmem (%p988_p5), [#allocation2], %s723_s9 }
  0x30   : > { %s1229_s10 = smov (!%p155_p6, %s154_s10), 14 }
  0x31   : > { %s1027_s11 = sshll.u32 %s1229_s10, 8 }
  0x32   : > { %s160_s17 = ssub.s32 3584, %s1027_s11 }
  0x33   : > { %161 = vsyncadd %s1030_s19, %s160_s17  ;;  %p613_p5 = scmp.ne.s32.totalorder %s1027_s11, 0  ;;  %s648_s22 = smul.u32 3584, %s918_s15 }
  0x34   : > { %s167_s27 = sshll.u32 %s152_s20, 4  ;;  %s828_s7 = scalar_lea.hbm %s1209_s0, 6400  ;;  %s1040_s27 = int_to_ptr.vmem [resolvable:$true] %s167_s27 }
  0x35   : > { %s1038_s30 = scalar_lea.hbm %s1209_s0, %s648_s22 }
  0x36   : > { %s824_s4 = scalar_lea.hbm %s1038_s30, %s1027_s11  ;;  %p829_p2 = scmp.lt.s32.totalorder %s1038_s30, %s1209_s0 }
  0x37   : > { %p825_p11 = scmp.ne.s32.totalorder %s1038_s30, %s824_s4  ;;  %p830_p0 = scmp.lt.s32.totalorder %s828_s7, %s824_s4 }
  0x39   : > { %p826_p12 = pnand %p825_p11, %p613_p5  ;;  %p831_p7 = por %p830_p0, %p829_p2 }
  0x3b   : > { %p827_p1 = pneg %p826_p12 }
  0x3d   : > { %p832_p3 = pnand %p831_p7, %p827_p1 }
  0x3f   : > { %835 = shalt.err (!%p832_p3)
}
  0x40   : > { %s836_s10 = scalar_lea.vmem %s1040_s27, %s1027_s11  ;;  %s923_s17 = smov [#allocation2]  }
  0x41   : > { %p837_p8 = scmp.ne.s32.totalorder %s1040_s27, %s836_s10  ;;  %s840_s20 = sshll.u32 %s923_s17, 4  ;;  %s841_s20 = int_to_ptr.vmem [resolvable:$false] %s840_s20 }
  0x42   : > { %s842_s22 = scalar_lea.vmem %s841_s20, 7168  ;;  %p843_p11 = scmp.lt.s32.totalorder %s1040_s27, %s841_s20 }
  0x43   : > { %p838_p9 = pnand %p837_p8, %p613_p5  ;;  %p844_p12 = scmp.lt.s32.totalorder %s842_s22, %s836_s10 }
  0x45   : > { %p839_p6 = pneg %p838_p9  ;;  %p845_p10 = por %p844_p12, %p843_p11 }
  0x47   : > { %p846_p2 = pnand %p845_p10, %p839_p6 }
  0x49   : > { %849 = shalt.err (!%p846_p2)
}
  0x4a   : > { %s924_s28 = smov 256   ;;  %s925_s29 = smov 16  }
  0x4b   : > { %173 = dma.hbm_to_vmem [thread:$0]  (%p613_p5), %s1038_s30, %s1027_s11, %s1040_s27, %s1030_s19, %s924_s28, %s924_s28, %s925_s29  }
  0x4c PF: > { %179 = sbr.rel (%p1009_p13) target bundleno = 372 (0x174), region = 32  ;;  %s1069_s4 = sand.u32 (!%p1009_p13), 1, %s910_s13  }
  0x4d   : > { %s724_s5 = smul.u32 (!%p1009_p13), 224, %s1069_s4  ;;  %s182_s6 = scalar_lea.sflag (!%p1009_p13), [#allocation3], %s1069_s4 }
  0x4e   : > { %p1220_p10 = scmp.ne.s32.totalorder (!%p1009_p13), %s1216_s23, 0 }
  0x4f   : > { %s1073_s7 = scalar_lea.vmem (!%p1009_p13), [#allocation2], %s724_s5 }
  0x51   : > { %893 = dma.done.wait (%p1220_p10), %s182_s6, 3584  }
  0x52   : > { %895 = vsyncadd (%p1220_p10), %s182_s6, 4294963712 }
  0x53   : > { %897 = dma.done.wait (%p41_p4), [#allocation6], 2048  }
  0x54   : > { %899 = vsyncadd (%p41_p4), [#allocation6], 4294965248  ;;  %v782_v0 = vld [vmem:[#allocation5 + $0x78] sm:$0xff]   ;;  %v784_v2 = vld [vmem:[#allocation5 + $0x70] sm:$0xff]   ;;  %s725_s23 = smul.u32 112, %s1069_s4  ;;  %s505_s27 = scalar_lea.sflag [#allocation4], %s1069_s4 }
  0x55   : > { %v783_v1 = vld [vmem:[#allocation5 + $0x38] sm:$0xff]   ;;  %649 = vmatprep.subr.bf16.mxu0 %v782_v0  ;;  %707 = vmatprep.subr.bf16.mxu1 %v782_v0  ;;  %v785_v3 = vld [vmem:[#allocation5 + $0x30] sm:$0xff]   ;;  %v786_v4 = vld [vmem:[#allocation5 + $0x68] sm:$0xff]   ;;  %p1221_p4 = scmp.ne.s32.totalorder %s1217_s24, 0 }
  0x56   : > { %650 = vmatpush3.bf16.msra.mxu0 %v783_v1  ;;  %715 = vmatpush3.bf16.msra.mxu1 %v783_v1  ;;  %v787_v5 = vld [vmem:[#allocation5 + $0x28] sm:$0xff]   ;;  %v788_v6 = vld [vmem:[#allocation5 + $0x60] sm:$0xff]   ;;  %v790_v8 = vld [vmem:[#allocation5 + $0x58] sm:$0xff]   ;;  %s1119_s19 = scalar_lea.vmem [#allocation7], %s725_s23  ;;  %s512_s30 = smul.u32 (%p1221_p4), 14, %s970_s16 }
  0x57   : > { %651 = vmatprep.subr.bf16.mxu0 %v784_v2  ;;  %708 = vmatprep.subr.bf16.mxu1 %v784_v2  ;;  %v789_v7 = vld [vmem:[#allocation5 + $0x20] sm:$0xff]   ;;  %v791_v9 = vld [vmem:[#allocation5 + $0x18] sm:$0xff]   ;;  %v792_v10 = vld [vmem:[#allocation5 + $0x50] sm:$0xff]  }
  0x58   : > { %v225_v11 = vld [vmem:[%s1073_s7 + $0x8] sm:$0xff]  ;;  %v227_v12 = vld [vmem:[%s1073_s7 + $0x18] sm:$0xff]  ;;  %v793_v17 = vld [vmem:[#allocation5 + $0x10] sm:$0xff]   ;;  %s513_s8 = ssub.s32 (%p1221_p4), 25, %s512_s30 }
  0x59   : > { %v253_v13 = vpack.c.bf16 %v227_v12, %v225_v11  ;;  %v241_v14 = vld [vmem:[%s1073_s7 + $0x88] sm:$0xff]  ;;  %v243_v15 = vld [vmem:[%s1073_s7 + $0x98] sm:$0xff]  ;;  %v796_v20 = vld [vmem:[#allocation5 + $0x40] sm:$0xff]   ;;  %p514_p13 = scmp.lt.s32.totalorder (%p1221_p4), %s513_s8, 14 }
  0x5a   : > { %652 = vmatpush3.bf16.msra.mxu0 %v785_v3  ;;  %716 = vmatpush3.bf16.msra.mxu1 %v785_v3  ;;  %v261_v16 = vpack.c.bf16 %v243_v15, %v241_v14  ;;  %v794_v18 = vld [vmem:[#allocation5 + $0x48] sm:$0xff]   ;;  %v797_v21 = vld [vmem:[#allocation5] sm:$0xff]   ;;  %v226_v23 = vld [vmem:[%s1073_s7 + $0x10] sm:$0xff] }
  0x5b   : > { %653 = vmatprep.subr.bf16.mxu0 %v786_v4  ;;  %709 = vmatprep.subr.bf16.mxu1 %v786_v4  ;;  %v795_v19 = vld [vmem:[#allocation5 + $0x8] sm:$0xff]   ;;  %v224_v22 = vld [vmem:[%s1073_s7] sm:$0xff]  ;;  %v242_v25 = vld [vmem:[%s1073_s7 + $0x90] sm:$0xff] }
  0x5c   : > { %433 = vmatprep.mubr.bf16.mxu0 %v253_v13  ;;  %465 = vmatprep.mubr.bf16.mxu1 %v261_v16  ;;  %v240_v24 = vld [vmem:[%s1073_s7 + $0x80] sm:$0xff]  ;;  %v229_v26 = vld [vmem:[%s1073_s7 + $0x28] sm:$0xff]  ;;  %v231_v27 = vld [vmem:[%s1073_s7 + $0x38] sm:$0xff]  ;;  %v252_v30 = vpack.c.bf16 %v226_v23, %v224_v22 }
  0x5d   : > { %v245_v28 = vld [vmem:[%s1073_s7 + $0xa8] sm:$0xff]  ;;  %v247_v29 = vld [vmem:[%s1073_s7 + $0xb8] sm:$0xff]  ;;  %v260_v31 = vpack.c.bf16 %v242_v25, %v240_v24  ;;  %v255_v32 = vpack.c.bf16 %v231_v27, %v229_v26  ;;  %v228_v34 = vld [vmem:[%s1073_s7 + $0x20] sm:$0xff] }
  0x5e   : > { %654 = vmatpush3.bf16.msra.mxu0 %v787_v5  ;;  %717 = vmatpush3.bf16.msra.mxu1 %v787_v5  ;;  %v263_v33 = vpack.c.bf16 %v247_v29, %v245_v28  ;;  %v230_v35 = vld [vmem:[%s1073_s7 + $0x30] sm:$0xff]  ;;  %v244_v36 = vld [vmem:[%s1073_s7 + $0xa0] sm:$0xff]  ;;  %v233_v38 = vld [vmem:[%s1073_s7 + $0x48] sm:$0xff] }
  0x5f   : > { %655 = vmatprep.subr.bf16.mxu0 %v788_v6  ;;  %710 = vmatprep.subr.bf16.mxu1 %v788_v6  ;;  %v246_v37 = vld [vmem:[%s1073_s7 + $0xb0] sm:$0xff]  ;;  %v235_v39 = vld [vmem:[%s1073_s7 + $0x58] sm:$0xff]  ;;  %v249_v40 = vld [vmem:[%s1073_s7 + $0xc8] sm:$0xff]  ;;  %v254_v42 = vpack.c.bf16 %v230_v35, %v228_v34 }
  0x60   : > { %v251_v41 = vld [vmem:[%s1073_s7 + $0xd8] sm:$0xff]  ;;  %v262_v43 = vpack.c.bf16 %v246_v37, %v244_v36  ;;  %v257_v44 = vpack.c.bf16 %v235_v39, %v233_v38  ;;  %v232_v46 = vld [vmem:[%s1073_s7 + $0x40] sm:$0xff]  ;;  %v234_v47 = vld [vmem:[%s1073_s7 + $0x50] sm:$0xff] }
  0x61   : > { %v265_v45 = vpack.c.bf16 %v251_v41, %v249_v40  ;;  %v248_v48 = vld [vmem:[%s1073_s7 + $0xc0] sm:$0xff]  ;;  %v250_v49 = vld [vmem:[%s1073_s7 + $0xd0] sm:$0xff]  ;;  %v237_v50 = vld [vmem:[%s1073_s7 + $0x68] sm:$0xff]  ;;  %v256_v52 = vpack.c.bf16 %v234_v47, %v232_v46 }
  0x62   : > { %656 = vmatpush3.bf16.msra.mxu0 %v789_v7  ;;  %718 = vmatpush3.bf16.msra.mxu1 %v789_v7  ;;  %v239_v51 = vld [vmem:[%s1073_s7 + $0x78] sm:$0xff]  ;;  %v264_v53 = vpack.c.bf16 %v250_v49, %v248_v48  ;;  %v236_v55 = vld [vmem:[%s1073_s7 + $0x60] sm:$0xff]  ;;  %v238_v56 = vld [vmem:[%s1073_s7 + $0x70] sm:$0xff] }
  0x63   : > { %657 = vmatprep.subr.bf16.mxu0 %v790_v8  ;;  %711 = vmatprep.subr.bf16.mxu1 %v790_v8  ;;  %v259_v54 = vpack.c.bf16 %v239_v51, %v237_v50  ;;  %v258_v57 = vpack.c.bf16 %v238_v56, %v236_v55  ;;  %v1115_v60 = vld [vmem:[%s1211_s2] ss:$0 sm:$0xff] }
  0x66   : > { %658 = vmatpush3.bf16.msra.mxu0 %v791_v9  ;;  %719 = vmatpush3.bf16.msra.mxu1 %v791_v9 }
  0x67   : > { %659 = vmatprep.subr.bf16.mxu0 %v792_v10  ;;  %712 = vmatprep.subr.bf16.mxu1 %v792_v10 }
  0x6a   : > { %660 = vmatpush3.bf16.msra.mxu0 %v793_v17  ;;  %720 = vmatpush3.bf16.msra.mxu1 %v793_v17 }
  0x6b   : > { %661 = vmatprep.subr.bf16.mxu0 %v794_v18  ;;  %713 = vmatprep.subr.bf16.mxu1 %v794_v18 }
  0x6e   : > { %662 = vmatpush3.bf16.msra.mxu0 %v795_v19  ;;  %721 = vmatpush3.bf16.msra.mxu1 %v795_v19 }
  0x6f   : > { %663 = vmatprep.subr.bf16.mxu0 %v796_v20  ;;  %714 = vmatprep.subr.bf16.mxu1 %v796_v20 }
  0x72   : > { %664 = vmatpush3.bf16.msra.mxu0 %v797_v21  ;;  %722 = vmatpush3.bf16.msra.mxu1 %v797_v21 }
  0x75   : > { %434 = vmatmul.mubr.bf16.vlgmr.msra.gmra.mxu0 %v252_v30  ;;  %466 = vmatmul.mubr.bf16.vlgmr.msra.gmra.mxu1 %v260_v31 }
  0x76   : > { %441 = vmatprep.mubr.bf16.mxu0 %v255_v32  ;;  %473 = vmatprep.mubr.bf16.mxu1 %v263_v33 }
  0x7d   : > { %442 = vmatmul.mubr.bf16.gmra.mxu0 %v254_v42  ;;  %474 = vmatmul.mubr.bf16.gmra.mxu1 %v262_v43 }
  0x7e   : > { %449 = vmatprep.mubr.bf16.mxu0 %v257_v44  ;;  %481 = vmatprep.mubr.bf16.mxu1 %v265_v45 }
  0x85   : > { %450 = vmatmul.mubr.bf16.gmra.mxu0 %v256_v52  ;;  %482 = vmatmul.mubr.bf16.gmra.mxu1 %v264_v53 }
  0x86   : > { %457 = vmatprep.mubr.bf16.mxu0 %v259_v54 }
  0x8d   : > { %458 = vmatmul.mubr.bf16.gmra.mxu0 %v258_v57 }
 0x135   : > { %v665_v58 = vpop.f32.mrf.mxu0  ;;  %v689_v59 = vpop.f32.mrf.mxu1 }
 0x137   : > { %v666_v61 = vpop.f32.mrf.mxu0  ;;  %v690_v62 = vpop.f32.mrf.mxu1 }
 0x138   : > { %v667_v63 = vadd.f32 %v666_v61, %v665_v58  ;;  %v691_v0 = vadd.f32 %v690_v62, %v689_v59 }
 0x139   : > { %v668_v1 = vpop.f32.mrf.mxu0  ;;  %v692_v2 = vpop.f32.mrf.mxu1 }
 0x13a   : > { %v436_v3 = vadd.f32 %v667_v63, %v1115_v60  ;;  %v468_v4 = vadd.f32 %v691_v0, %v1115_v60 }
 0x13b   : > { %v669_v5 = vpop.f32.mrf.mxu0  ;;  %v693_v6 = vpop.f32.mrf.mxu1 }
 0x13c   : > { %490 = vst [vmem:[%s1119_s19] sm:$0xff] %v436_v3  ;;  %498 = vst [vmem:[%s1119_s19 + $0x40] sm:$0xff] %v468_v4  ;;  %v670_v7 = vadd.f32 %v669_v5, %v668_v1  ;;  %v694_v8 = vadd.f32 %v693_v6, %v692_v2 }
 0x13d   : > { %v671_v9 = vpop.f32.mrf.mxu0  ;;  %v695_v10 = vpop.f32.mrf.mxu1 }
 0x13e   : > { %v439_v11 = vadd.f32 %v670_v7, %v1115_v60  ;;  %v471_v12 = vadd.f32 %v694_v8, %v1115_v60 }
 0x13f   : > { %v672_v13 = vpop.f32.mrf.mxu0  ;;  %v696_v14 = vpop.f32.mrf.mxu1 }
 0x140   : > { %491 = vst [vmem:[%s1119_s19 + $0x8] sm:$0xff] %v439_v11  ;;  %499 = vst [vmem:[%s1119_s19 + $0x48] sm:$0xff] %v471_v12  ;;  %v673_v15 = vadd.f32 %v672_v13, %v671_v9  ;;  %v697_v16 = vadd.f32 %v696_v14, %v695_v10 }
 0x141   : > { %v674_v17 = vpop.f32.mrf.mxu0  ;;  %v698_v18 = vpop.f32.mrf.mxu1 }
 0x142   : > { %v444_v19 = vadd.f32 %v673_v15, %v1115_v60  ;;  %v476_v20 = vadd.f32 %v697_v16, %v1115_v60 }
 0x143   : > { %v675_v21 = vpop.f32.mrf.mxu0  ;;  %v699_v22 = vpop.f32.mrf.mxu1 }
 0x144   : > { %492 = vst [vmem:[%s1119_s19 + $0x10] sm:$0xff] %v444_v19  ;;  %500 = vst [vmem:[%s1119_s19 + $0x50] sm:$0xff] %v476_v20  ;;  %v676_v23 = vadd.f32 %v675_v21, %v674_v17  ;;  %v700_v24 = vadd.f32 %v699_v22, %v698_v18 }
 0x145   : > { %v677_v25 = vpop.f32.mrf.mxu0  ;;  %v701_v26 = vpop.f32.mrf.mxu1 }
 0x146   : > { %v447_v27 = vadd.f32 %v676_v23, %v1115_v60  ;;  %v479_v28 = vadd.f32 %v700_v24, %v1115_v60 }
 0x147   : > { %v678_v29 = vpop.f32.mrf.mxu0  ;;  %v702_v30 = vpop.f32.mrf.mxu1 }
 0x148   : > { %493 = vst [vmem:[%s1119_s19 + $0x18] sm:$0xff] %v447_v27  ;;  %501 = vst [vmem:[%s1119_s19 + $0x58] sm:$0xff] %v479_v28  ;;  %v679_v31 = vadd.f32 %v678_v29, %v677_v25  ;;  %v703_v32 = vadd.f32 %v702_v30, %v701_v26 }
 0x149   : > { %v680_v33 = vpop.f32.mrf.mxu0  ;;  %v704_v34 = vpop.f32.mrf.mxu1 }
 0x14a   : > { %v452_v35 = vadd.f32 %v679_v31, %v1115_v60  ;;  %v484_v36 = vadd.f32 %v703_v32, %v1115_v60 }
 0x14b   : > { %v681_v37 = vpop.f32.mrf.mxu0  ;;  %v705_v38 = vpop.f32.mrf.mxu1 }
 0x14c   : > { %494 = vst [vmem:[%s1119_s19 + $0x20] sm:$0xff] %v452_v35  ;;  %502 = vst [vmem:[%s1119_s19 + $0x60] sm:$0xff] %v484_v36  ;;  %v682_v39 = vadd.f32 %v681_v37, %v680_v33  ;;  %v706_v40 = vadd.f32 %v705_v38, %v704_v34 }
 0x14d   : > { %v683_v41 = vpop.f32.mrf.mxu0 }
 0x14e   : > { %v455_v42 = vadd.f32 %v682_v39, %v1115_v60  ;;  %v487_v43 = vadd.f32 %v706_v40, %v1115_v60 }
 0x14f   : > { %v684_v44 = vpop.f32.mrf.mxu0 }
 0x150   : > { %495 = vst [vmem:[%s1119_s19 + $0x28] sm:$0xff] %v455_v42  ;;  %503 = vst [vmem:[%s1119_s19 + $0x68] sm:$0xff] %v487_v43  ;;  %v685_v45 = vadd.f32 %v684_v44, %v683_v41 }
 0x151   : > { %v686_v46 = vpop.f32.mrf.mxu0 }
 0x152   : > { %v460_v47 = vadd.f32 %v685_v45, %v1115_v60 }
 0x153   : > { %v687_v48 = vpop.f32.mrf.mxu0 }
 0x154   : > { %496 = vst [vmem:[%s1119_s19 + $0x30] sm:$0xff] %v460_v47  ;;  %v688_v49 = vadd.f32 %v687_v48, %v686_v46  ;;  %511 = sbr.rel (!%p1221_p4) target bundleno = 372 (0x174), region = 44 }
 0x156   : > { %v463_v50 = vadd.f32 %v688_v49, %v1115_v60 }
 0x158   : > { %497 = vst [vmem:[%s1119_s19 + $0x38] sm:$0xff] %v463_v50 }
 0x159   : > { %s1231_s8 = smov (!%p514_p13, %s513_s8), 14 }
 0x15a   : > { %s1151_s9 = sshll.u32 %s1231_s8, 7 }
 0x15b   : > { %s518_s10 = ssub.s32 1792, %s1151_s9 }
 0x15c   : > { %519 = vsyncadd %s505_s27, %s518_s10  ;;  %p638_p5 = scmp.ne.s32.totalorder %s1151_s9, 0  ;;  %s647_s24 = smul.u32 1792, %s970_s16 }
 0x15d   : > { %s524_s17 = sshll.u32 %s1119_s19, 4  ;;  %s926_s5 = smov [#allocation7]   ;;  %s1164_s17 = int_to_ptr.vmem [resolvable:$true] %s524_s17 }
 0x15e   : > { %s1162_s28 = scalar_lea.hbm %s1212_s3, %s647_s24  ;;  %s850_s29 = scalar_lea.vmem %s1164_s17, %s1151_s9 }
 0x15f   : > { %p851_p1 = scmp.ne.s32.totalorder %s1164_s17, %s850_s29  ;;  %s854_s6 = sshll.u32 %s926_s5, 4  ;;  %s855_s6 = int_to_ptr.vmem [resolvable:$false] %s854_s6 }
 0x160   : > { %s856_s16 = scalar_lea.vmem %s855_s6, 3584  ;;  %p857_p3 = scmp.lt.s32.totalorder %s1164_s17, %s855_s6 }
 0x161   : > { %p852_p0 = pnand %p851_p1, %p638_p5  ;;  %p858_p8 = scmp.lt.s32.totalorder %s856_s16, %s850_s29 }
 0x163   : > { %p853_p7 = pneg %p852_p0  ;;  %p859_p9 = por %p858_p8, %p857_p3 }
 0x165   : > { %p860_p6 = pnand %p859_p9, %p853_p7 }
 0x167   : > { %863 = shalt.err (!%p860_p6)
}
 0x168   : > { %s864_s7 = scalar_lea.hbm %s1162_s28, %s1151_s9  ;;  %s868_s11 = scalar_lea.hbm %s1212_s3, 3200 }
 0x169   : > { %p865_p11 = scmp.ne.s32.totalorder %s1162_s28, %s864_s7  ;;  %p869_p10 = scmp.lt.s32.totalorder %s1162_s28, %s1212_s3 }
 0x16a   : > { %p870_p4 = scmp.lt.s32.totalorder %s868_s11, %s864_s7 }
 0x16b   : > { %p866_p12 = pnand %p865_p11, %p638_p5 }
 0x16c   : > { %p871_p13 = por %p870_p4, %p869_p10 }
 0x16d   : > { %p867_p2 = pneg %p866_p12 }
 0x16f   : > { %p872_p1 = pnand %p871_p13, %p867_p2 }
 0x171   : > { %875 = shalt.err (!%p872_p1)
}
 0x172   : > { %s927_s8 = smov 128   ;;  %s928_s10 = smov 8  }
 0x173   : > { %530 = dma.vmem_to_hbm [thread:$0]  (%p638_p5), %s1164_s17, %s1151_s9, %s1162_s28, %s505_s27, %s927_s8, %s927_s8, %s928_s10  }
 0x174 PF: > { %s539_s24 = sand.u32 1, %s906_s12   ;;  %p1222_p0 = scmp.ne.s32.totalorder %s1218_s25, 0 }
 0x175   : > { %p1223_p7 = scmp.ge.s32.totalorder %s918_s15, 2  ;;  %s540_s20 = scalar_lea.sflag [#allocation4], %s539_s24 }
 0x177   : > { %p737_p3 = pnand %p1223_p7, %p1222_p0 }
 0x179   : > { %p738_p8 = pneg %p737_p3 }
 0x17b   : > { %901 = dma.done.wait (%p738_p8), %s540_s20, 1792  }
 0x17c   : > { %903 = vsyncadd (%p738_p8), %s540_s20, 4294965504  ;;  %p17_p9 = scmp.ge.s32.totalorder %s974_s18, 4   ;;  %s1224_s12 = smov %s910_s13 }
 0x17d   : > { %s1225_s13 = smov %s914_s14  ;;  %s1226_s14 = smov %s986_s21 }
 0x17e   : > { %s1227_s15 = smov %s974_s18  ;;  %19 = sbr.rel (!%p17_p9) target bundleno = 6 (0x6), region = 81 }
 0x183   :  { %545 = vsyncpa [#allocation3], 1 }
 0x184   :  { %547 = vsyncpa [#allocation3 + $0x1], 1 }
 0x185   :  { %548 = vsyncpa [#allocation6], 1 }
 0x186   :  { %549 = vsyncpa [#allocation4], 1 }
 0x187   :  { %551 = vsyncpa [#allocation4 + $0x1], 1 }

</bundles_post_ra>
